<compile_context>
chip_gen: v5e
topology: v5e:2x2
jax: 0.10.0
libtpu: 0.0.40
codegen_flags: <defaults>
</compile_context>

<pallas_src>
import functools

import jax
import jax.numpy as jnp
from jax.experimental import pallas as pl
from jax.experimental.pallas import tpu as pltpu

_LANE = 128
# Max columns per block: (2, 65536) f32 = 512 KiB logical, ~2 MiB in VMEM after
# 8-sublane padding; in+out double-buffered ~8 MiB -> safe under the default
# scoped-VMEM limit on v5e (16 MiB), v6e (32 MiB) and v7x (32 MiB of 64 MiB).
_MAX_BLOCK_COLS = 512 * _LANE
_MIN_GRID_BLOCKS = 4  # keep >=4 steps for DMA/compute overlap + v7x 2-TC split

# Constant parameters of MyModel (mirrors the PyTorch __init__).
_W = ((1.0, 0.0),
      (0.0, 1.0))
_B = (2.0, 3.0)


def _round_up(a, m):
    return ((a + m - 1) // m) * m


def _affine_kernel(x_ref, o_ref, *, w, b):
    """VPU-only affine on a (2, T) lane-dense block: y[r] = sum_c w[r][c]*x[c] + b[r].

    W/b are Python floats folded at trace time (zero coefficients are skipped,
    unit coefficients avoid the multiply) -- valid because they are fixed
    module constants, not runtime parameters.
    """
    rows = (x_ref[0, :], x_ref[1, :])          # each (T,), T a multiple of 128
    for r in range(2):
        acc = None
        for c in range(2):
            coef = float(w[r][c])
            if coef == 0.0:
                continue
            term = rows[c] if coef == 1.0 else coef * rows[c]
            acc = term if acc is None else acc + term
        if acc is None:
            acc = jnp.zeros_like(rows[0])
        o_ref[r, :] = acc + float(b[r])


def _reference(x):
    w = jnp.array(_W, dtype=jnp.float32)
    b = jnp.array(_B, dtype=jnp.float32).reshape(2, 1)
    return w @ x.astype(jnp.float32) + b


def my_model_forward(x):
    """JAX/Pallas equivalent of MyModel.forward: W @ x + b for x of shape (2, N)."""
    x = jnp.asarray(x, jnp.float32)
    n = int(x.shape[1])

    # Tiny batches: kernel launch + DMA setup is pure overhead -> plain JAX.
    if n < _LANE:
        return _reference(x)

    # Columns per block: aim for >= _MIN_GRID_BLOCKS grid steps (pipelining +
    # v7x megacore), each a lane-dense multiple of 128, capped by the VMEM
    # budget above.  The final block may be partial; Pallas masks it.
    cols_per_block = min(
        _MAX_BLOCK_COLS,
        max(_LANE, _round_up(pl.cdiv(n, _MIN_GRID_BLOCKS), _LANE)),
    )
    grid = (pl.cdiv(n, cols_per_block),)

    kernel = functools.partial(_affine_kernel, w=_W, b=_B)
    out = pl.pallas_call(
        kernel,
        out_shape=jax.ShapeDtypeStruct((2, n), jnp.float32),
        grid=grid,
        in_specs=[pl.BlockSpec((2, cols_per_block), lambda i: (0, i))],
        out_specs=pl.BlockSpec((2, cols_per_block), lambda i: (0, i)),
        compiler_params=pltpu.CompilerParams(
            dimension_semantics=("parallel",),   # independent column tiles
        ),
    )(x)
    return out


if __name__ == "__main__":
    root = jax.random.PRNGKey(0)
    k0, k1, k2 = jax.random.split(root, 3)

    # Kernel path: batch of 1024 column vectors of size 2 -> shape (2, 1024).
    x = jax.random.normal(k0, (2, 1024), dtype=jnp.float32)
    y = jax.block_until_ready(my_model_forward(x))
    assert y.shape == (2, 1024)
    assert jnp.allclose(y, _reference(x), atol=1e-5), "mismatch vs reference (large)"

    # Ragged path (N=200): partial final block, no padding / slicing in wrapper.
    x_ragged = jax.random.normal(k1, (2, 200), dtype=jnp.float32)
    y_ragged = jax.block_until_ready(my_model_forward(x_ragged))
    assert y_ragged.shape == (2, 200)
    assert jnp.allclose(y_ragged, _reference(x_ragged), atol=1e-5), "mismatch (ragged)"

    # Tiny-batch path (N=8): dispatches to plain JAX per the size gate.
    x_small = jax.random.normal(k2, (2, 8), dtype=jnp.float32)
    y_small = jax.block_until_ready(my_model_forward(x_small))
    assert y_small.shape == (2, 8)
    assert jnp.allclose(y_small, _reference(x_small), atol=1e-5), "mismatch (small)"

    print("KERNEL_OK")
</pallas_src>

<mosaic_0001>
module attributes {stable_mosaic.version = 11 : i64} {
  func.func @_affine_kernel(%arg0: i32, %arg1: memref<2x256xf32, #tpu.memory_space<vmem>>, %arg2: memref<2x256xf32, #tpu.memory_space<vmem>>) attributes {dimension_semantics = [#tpu.dimension_semantics<parallel>], iteration_bounds = array<i64: 4>, scalar_prefetch = 0 : i64, scratch_operands = 0 : i64, tpu.core_type = #tpu.core_type<tc>, window_params = [{transform_indices = @transform_0, window_bounds = array<i64: 2, 256>}, {transform_indices = @transform_1, window_bounds = array<i64: 2, 256>}]} {
    %c0 = arith.constant 0 : index
    %c0_0 = arith.constant 0 : index
    %0 = vector.load %arg1[%c0, %c0_0] : memref<2x256xf32, #tpu.memory_space<vmem>>, vector<1x256xf32>
    %1 = vector.shape_cast %0 : vector<1x256xf32> to vector<256xf32>
    %c1 = arith.constant 1 : index
    %c0_1 = arith.constant 0 : index
    %2 = vector.load %arg1[%c1, %c0_1] : memref<2x256xf32, #tpu.memory_space<vmem>>, vector<1x256xf32>
    %3 = vector.shape_cast %2 : vector<1x256xf32> to vector<256xf32>
    %cst = arith.constant 2.000000e+00 : f32
    %4 = vector.broadcast %cst : f32 to vector<256xf32>
    %5 = arith.addf %1, %4 : vector<256xf32>
    %c0_2 = arith.constant 0 : index
    %c0_3 = arith.constant 0 : index
    %6 = vector.load %arg2[%c0_2, %c0_3] : memref<2x256xf32, #tpu.memory_space<vmem>>, vector<1x256xf32>
    %7 = vector.shape_cast %6 : vector<1x256xf32> to vector<256xf32>
    %8 = vector.shape_cast %5 : vector<256xf32> to vector<1x256xf32>
    tpu.vector_store %arg2[%c0_2, %c0_3], %8 {strides = array<i32>} : memref<2x256xf32, #tpu.memory_space<vmem>>, vector<1x256xf32>,
    %cst_4 = arith.constant 3.000000e+00 : f32
    %9 = vector.broadcast %cst_4 : f32 to vector<256xf32>
    %10 = arith.addf %3, %9 : vector<256xf32>
    %c1_5 = arith.constant 1 : index
    %c0_6 = arith.constant 0 : index
    %11 = vector.load %arg2[%c1_5, %c0_6] : memref<2x256xf32, #tpu.memory_space<vmem>>, vector<1x256xf32>
    %12 = vector.shape_cast %11 : vector<1x256xf32> to vector<256xf32>
    %13 = vector.shape_cast %10 : vector<256xf32> to vector<1x256xf32>
    tpu.vector_store %arg2[%c1_5, %c0_6], %13 {strides = array<i32>} : memref<2x256xf32, #tpu.memory_space<vmem>>, vector<1x256xf32>,
    return
  }
  func.func @transform_0(%arg0: i32) -> (i32, i32) {
    %c0_i32 = arith.constant 0 : i32
    %c0_i32_0 = arith.constant 0 : i32
    return %c0_i32, %arg0 : i32, i32
  }
  func.func @transform_1(%arg0: i32) -> (i32, i32) {
    %c0_i32 = arith.constant 0 : i32
    %c0_i32_0 = arith.constant 0 : i32
    return %c0_i32, %arg0 : i32, i32
  }
}

</mosaic_0001>

<bundles_post_ra>
// kernel: tpu_custom_call.1
= control target key start
LH: loop header
LB: loop body
LE: loop exit
PB: predicated region body
PF: predicated region fallthrough
CT: control target
= control target key end

     0   :  { %6 = vsyncpa [#allocation3], 0  ;;  %s533_s0 = inlined_call_operand.hbm [shape: f32[2,1024], index: 0, kind: input, shape index: {}]   ;;  %s534_s1 = inlined_call_operand.hbm [shape: f32[2,1024], index: 1, kind: output, shape index: {}]  }
   0x1   :  { %8 = vsyncpa [#allocation3 + $0x1], 0 }
   0x2   :  { %9 = vsyncpa [#allocation4], 0 }
   0x3   :  { %11 = vsyncpa [#allocation4 + $0x1], 0  ;;  %s408_s6 = smov 0   ;;  %s410_s7 = smov 0  }
   0x4   :  { %s412_s8 = smov 0   ;;  %s414_s9 = smov 0  }
   0x5 LB: > { %s429_s10 = sadd.s32 4294967295, %s396_s9   ;;  %s236_s11 = sadd.s32 4294967294, %s396_s9   ;;  %s396_s9 = sphi %s414_s9, %s543_s9   ;;  %s392_s8 = sphi %s412_s8, %s542_s8   ;;  %s388_s7 = sphi %s410_s7, %s541_s7   ;;  %s384_s6 = sphi %s408_s6, %s540_s6  }
   0x6   : > { %s433_s12 = sadd.s32 1, %s396_s9   ;;  %s24_s13 = sadd.s32 1, %s392_s8 }
   0x7   : > { %s21_s14 = ssub.s32 %s396_s9, %s433_s12  ;;  %p31_p0 = scmp.ne.s32.totalorder %s392_s8, %s388_s7 }
   0x8   : > { %p22_p1 = scmp.eq.s32.totalorder %s21_s14, 0  ;;  %p32_p2 = scmp.eq.s32.totalorder %s396_s9, 0 }
   0x9   : > { %p37_p3 = scmp.ne.s32.totalorder %s388_s7, %s384_s6  ;;  %p38_p4 = scmp.eq.s32.totalorder %s429_s10, 0 }
   0xa   : > { %s445_s15 = scalar_select %p22_p1, %s392_s8, %s24_s13  }
   0xb   : > { %p447_p5 = por %p32_p2, %p31_p0  ;;  %p451_p6 = por %p38_p4, %p37_p3 }
   0xc   : > { %p61_p7 = scmp.eq.s32.totalorder %s429_s10, 3  ;;  %p67_p8 = scmp.eq.s32.totalorder %s236_s11, 3 }
   0xd   : > { %p266_p9 = scmp.lt.s32.totalorder %s396_s9, 4  ;;  %s87_s20 = sand.u32 1, %s392_s8  }
   0xe   : > { %p457_p10 = por %p61_p7, %p31_p0  ;;  %p461_p11 = por %p67_p8, %p37_p3 }
   0xf   : > { %s252_s21 = sshll.u32 %s396_s9, 2  ;;  %s239_s22 = sshll.u32 %s87_s20, 2 }
  0x10   : > { %s96_s25 = scalar_lea.hbm %s533_s0, %s252_s21  ;;  %s91_s27 = scalar_lea.vmem [#allocation2], %s239_s22 }
  0x11   : > { %s98_s26 = sshll.u32 %s96_s25, 4  ;;  %s100_s28 = sshll.u32 %s91_s27, 4  ;;  %s99_s26 = int_to_ptr.hbm [resolvable:$true] %s98_s26  ;;  %s101_s28 = int_to_ptr.vmem [resolvable:$true] %s100_s28 }
  0x12   : > { %p472_p12 = pnand %p266_p9, %p447_p5  ;;  %p242_p13 = scmp.ge.s32.totalorder %s396_s9, 1 }
  0x13   : > { %p105_p0 = scmp.lt.s32.totalorder %s396_s9, 5  ;;  %s88_s30 = scalar_lea.sflag [#allocation3], %s87_s20 }
  0x14   : > { %s300_s2 = sshra.s32 %s99_s26, 4  ;;  %p304_p2 = pneg %p472_p12  ;;  %s301_s2 = int_to_ptr.hbm [resolvable:$true] %s300_s2 }
  0x15   : > { %s302_s3 = scalar_lea.hbm %s301_s2, 4  ;;  %s307_s11 = scalar_lea.hbm %s533_s0, 16 }
  0x16   : > { %p303_p1 = scmp.ne.s32.totalorder %s301_s2, %s302_s3  ;;  %p308_p5 = scmp.lt.s32.totalorder %s301_s2, %s533_s0 }
  0x17   : > { %p309_p7 = scmp.lt.s32.totalorder %s307_s11, %s302_s3 }
  0x18   : > { %p305_p3 = pnand %p304_p2, %p303_p1 }
  0x19   : > { %p310_p8 = por %p309_p7, %p308_p5 }
  0x1a   : > { %p306_p4 = pneg %p305_p3 }
  0x1c   : > { %p311_p9 = pnand %p310_p8, %p306_p4 }
  0x1e   : > { %314 = shalt.err (!%p311_p9)
}
  0x1f   : > { %261 = dma.hbm_to_vmem [thread:$0]  (!%p472_p12), %s99_s26, 64, %s101_s28, %s88_s30  }
  0x20   : > { %p106_p1 = pnand %p242_p13, %p105_p0 }
  0x21   : > { %s493_s16 = sand.u32 (!%p106_p1), 1, %s388_s7  }
  0x22   : > { %109 = sbr.rel (%p106_p1) target bundleno = 55 (0x37), region = 24  ;;  %s243_s20 = sshll.u32 (!%p106_p1), %s493_s16, 2 }
  0x23   : > { %s112_s21 = scalar_lea.sflag (!%p106_p1), [#allocation3], %s493_s16  ;;  %s115_s22 = scalar_lea.vmem (!%p106_p1), [#allocation2], %s243_s20 }
  0x27   : > { %375 = dma.done.wait (%p451_p6), %s112_s21, 64  }
  0x28   : > { %377 = vsyncadd (%p451_p6), %s112_s21, 4294967232  ;;  %s253_s23 = sshll.u32 %s429_s10, 2  ;;  %v141_v0 = vlaneseq  ;;  %s134_s27 = scalar_lea.vmem [#allocation5], %s243_s20  ;;  %v137_v1 = vld [vmem:[%s115_s22] ss:$2 sm:$0x3] }
  0x29   : > { %s161_s26 = scalar_lea.hbm %s534_s1, %s253_s23  ;;  %s163_s28 = sshll.u32 %s134_s27, 4  ;;  %v245_v2 = vld [vmem:[%s115_s22 + $0x1] ss:$2 sm:$0x3]  ;;  %v140_v3 = vadd.f32 2.0, %v137_v1  ;;  %s164_s28 = int_to_ptr.vmem [resolvable:$true] %s163_s28 }
  0x2a   : > { %vm143_vm0 = vcmp.lt.s32.totalorder %v141_v0, 256  ;;  %s165_s29 = sshll.u32 %s161_s26, 4  ;;  %v146_v4 = vadd.f32 3.0, %v245_v2  ;;  %s150_s17 = scalar_lea.sflag [#allocation4], %s493_s16  ;;  %s166_s29 = int_to_ptr.hbm [resolvable:$true] %s165_s29 }
  0x2b   : > { %145 = vst.msk [vmem:[%s134_s27] ss:$2 sm:$0x3] %vm143_vm0, %v140_v3  ;;  %s344_s10 = sshra.s32 %s166_s29, 4  ;;  %s350_s4 = scalar_lea.hbm %s534_s1, 16  ;;  %s345_s10 = int_to_ptr.hbm [resolvable:$true] %s344_s10 }
  0x2c   : > { %246 = vst.msk [vmem:[%s134_s27 + $0x1] ss:$2 sm:$0x3] %vm143_vm0, %v146_v4  ;;  %s346_s30 = scalar_lea.hbm %s345_s10, 4  ;;  %p351_p0 = scmp.lt.s32.totalorder %s345_s10, %s534_s1 }
  0x2d   : > { %p347_p6 = scmp.ne.s32.totalorder %s345_s10, %s346_s30  ;;  %p352_p2 = scmp.lt.s32.totalorder %s350_s4, %s346_s30 }
  0x2f   : > { %p348_p12 = pnand %p347_p6, %p457_p10  ;;  %p353_p3 = por %p352_p2, %p351_p0 }
  0x31   : > { %p349_p13 = pneg %p348_p12 }
  0x33   : > { %p354_p4 = pnand %p353_p3, %p349_p13 }
  0x35   : > { %357 = shalt.err (!%p354_p4)
}
  0x36   : > { %256 = dma.vmem_to_hbm [thread:$0]  (%p457_p10), %s164_s28, 64, %s166_s29, %s150_s17  }
  0x37 PF: > { %p267_p5 = scmp.ge.s32.totalorder %s396_s9, 2  ;;  %s177_s13 = sand.u32 1, %s384_s6  }
  0x38   : > { %s178_s14 = scalar_lea.sflag [#allocation4], %s177_s13 }
  0x39   : > { %p263_p7 = pnand %p267_p5, %p461_p11 }
  0x3b   : > { %p264_p8 = pneg %p263_p7 }
  0x3d   : > { %379 = dma.done.wait (%p264_p8), %s178_s14, 64  }
  0x3e   : > { %381 = vsyncadd (%p264_p8), %s178_s14, 4294967232  ;;  %p14_p9 = scmp.ge.s32.totalorder %s433_s12, 6   ;;  %s540_s6 = smov %s388_s7 }
  0x3f   : > { %s541_s7 = smov %s392_s8  ;;  %s542_s8 = smov %s445_s15 }
  0x40   : > { %s543_s9 = smov %s433_s12  ;;  %16 = sbr.rel (!%p14_p9) target bundleno = 5 (0x5), region = 71 }
  0x45   :  { %184 = vsyncpa [#allocation3], 1 }
  0x46   :  { %186 = vsyncpa [#allocation3 + $0x1], 1 }
  0x47   :  { %187 = vsyncpa [#allocation4], 1 }
  0x48   :  { %189 = vsyncpa [#allocation4 + $0x1], 1 }

</bundles_post_ra>
